<compile_context>
chip_gen: v6e
topology: v6e:2x2x1
jax: 0.10.0
libtpu: 0.0.40
codegen_flags: <defaults>
</compile_context>

<pallas_src>
import functools

import jax
import jax.numpy as jnp
from jax.experimental import pallas as pl
from jax.experimental.pallas import tpu as pltpu


def _round_up(v, m):
    return pl.cdiv(v, m) * m


_SMALL_L_MAX = 64  # threshold between the VPU outer-product path and the MXU path


# ---------------------------------------------------------------------------
# Small-L path: VPU broadcast outer product, lane-dense output.
# ---------------------------------------------------------------------------
def _selmul_outer_kernel(xi_ref, xj_ref, o_ref):
    # (tb, L, 1) * (tb, 1, L_pad) -> (tb, L, L_pad): pure broadcast multiply on the VPU.
    o_ref[...] = (xi_ref[...] * xj_ref[...]).astype(o_ref.dtype)


# ---------------------------------------------------------------------------
# Large-L path: one-hot selection matmuls; one-hot tiles generated in-kernel.
# ---------------------------------------------------------------------------
def _selmul_matmul_kernel(jidx_ref, iidx_ref, x_ref, o_ref):
    x = x_ref[...]                      # (tb, L) bf16
    L = x.shape[-1]
    tn = o_ref.shape[-1]
    row = jax.lax.broadcasted_iota(jnp.int32, (L, tn), 0)
    # One-hot columns (padded columns carry index -1 -> all-zero column -> zero output).
    sel_j = jnp.where(row == jidx_ref[...], 1.0, 0.0).astype(x.dtype)   # (L, tn)
    sel_i = jnp.where(row == iidx_ref[...], 1.0, 0.0).astype(x.dtype)   # (L, tn)
    h1 = jnp.dot(x, sel_j, preferred_element_type=jnp.float32)          # x[b, j_k]
    h2 = jnp.dot(x, sel_i, preferred_element_type=jnp.float32)          # x[b, i_k]
    o_ref[...] = (h1 * h2).astype(o_ref.dtype)


@functools.partial(
    jax.jit, static_argnames=("batch_tile", "pair_tile", "force_matmul_path"))
def selmul_forward(x, *, batch_tile=256, pair_tile=1024, force_matmul_path=False):
    # TODO(synk): custom __segs / __selected_segs keyword paths not implemented; only
    # the module's default segmentation (upper-triangular selection) is supported.
    if x.ndim == 1:
        x = x.reshape(1, -1)
    B, L = x.shape
    T = L * (L + 1) // 2
    iu_i, iu_j = jnp.triu_indices(L)   # i-major, j in [i, L): same order as the module

    use_matmul = force_matmul_path or (L > _SMALL_L_MAX)

    if not use_matmul:
        # ---------------- small-L path ----------------
        L_pad = _round_up(L, 128)
        # VMEM per batch row ~= 2 * (out tile + xi tile), double-buffered; keep < ~32 MiB.
        tb_cap = max(8, ((32 << 20) // (16 * L * L_pad)) // 8 * 8)
        tb = max(8, min(batch_tile, _round_up(B, 8), tb_cap))
        B_pad = _round_up(B, tb)

        xb = jnp.pad(x, ((0, B_pad - B), (0, 0)))
        xi = xb[:, :, None]                                     # (B_pad, L, 1)
        xj = jnp.pad(xb, ((0, 0), (0, L_pad - L)))[:, None, :]  # (B_pad, 1, L_pad)

        outer = pl.pallas_call(
            _selmul_outer_kernel,
            out_shape=jax.ShapeDtypeStruct((B_pad, L, L_pad), x.dtype),
            grid=(B_pad // tb,),
            in_specs=[
                pl.BlockSpec((tb, L, 1), lambda b: (b, 0, 0)),
                pl.BlockSpec((tb, 1, L_pad), lambda b: (b, 0, 0)),
            ],
            out_specs=pl.BlockSpec((tb, L, L_pad), lambda b: (b, 0, 0)),
            compiler_params=pltpu.CompilerParams(
                dimension_semantics=("parallel",),
                vmem_limit_bytes=48 * 1024 * 1024),
        )(xi, xj)
        # Triangle extraction is pure index plumbing; done in the wrapper (XLA gather).
        return outer[:B, iu_i, iu_j]

    # ---------------- large-L path ----------------
    tn = _round_up(min(pair_tile, _round_up(T, 128)), 128)   # lane-dense pair tile
    T_pad = _round_up(T, tn)
    tb = max(16, min(batch_tile, _round_up(B, 16)))
    B_pad = _round_up(B, tb)

    xb = jnp.pad(x, ((0, B_pad - B), (0, 0))).astype(jnp.bfloat16)
    pad_n = T_pad - T
    j_idx = jnp.concatenate(
        [iu_j.astype(jnp.int32), jnp.full((pad_n,), -1, jnp.int32)])[None, :]
    i_idx = jnp.concatenate(
        [iu_i.astype(jnp.int32), jnp.full((pad_n,), -1, jnp.int32)])[None, :]

    out = pl.pallas_call(
        _selmul_matmul_kernel,
        out_shape=jax.ShapeDtypeStruct((B_pad, T_pad), x.dtype),
        grid=(T_pad // tn, B_pad // tb),       # pair-tile OUTER, batch INNER
        in_specs=[
            pl.BlockSpec((1, tn), lambda n, b: (0, n)),   # j indices for this pair tile
            pl.BlockSpec((1, tn), lambda n, b: (0, n)),   # i indices for this pair tile
            pl.BlockSpec((tb, L), lambda n, b: (b, 0)),   # x batch tile
        ],
        out_specs=pl.BlockSpec((tb, tn), lambda n, b: (b, n)),
        compiler_params=pltpu.CompilerParams(
            dimension_semantics=("arbitrary", "parallel"),
            vmem_limit_bytes=48 * 1024 * 1024),
    )(j_idx, i_idx, xb)
    return out[:B, :T]


def selmul_reference(x):
    # Pure-JAX reference of the PyTorch forward (default segs path).
    B, L = x.shape
    outer = x[:, :, None] * x[:, None, :]
    iu_i, iu_j = jnp.triu_indices(L)
    return outer[:, iu_i, iu_j]


if __name__ == "__main__":
    key = jax.random.PRNGKey(0)
    B, L = 8, 16
    x = jax.random.normal(key, (B, L), dtype=jnp.float32)
    ref = selmul_reference(x)
    T = L * (L + 1) // 2

    # Small-L (VPU outer-product) path — exact in f32.
    out_a = jax.block_until_ready(selmul_forward(x))
    assert out_a.shape == (B, T), out_a.shape
    assert bool(jnp.allclose(out_a, ref, atol=1e-5, rtol=1e-5)), "outer-product path mismatch"

    # Large-L (MXU one-hot matmul) path, forced at this small shape as a smoke test.
    # It computes in bf16 (selection itself is exact), so use a looser tolerance.
    out_b = jax.block_until_ready(selmul_forward(x, force_matmul_path=True))
    assert out_b.shape == (B, T), out_b.shape
    assert bool(jnp.allclose(out_b, ref, atol=5e-2, rtol=2e-2)), "matmul path mismatch"

    print("KERNEL_OK")
</pallas_src>

<mosaic_0001>
module attributes {stable_mosaic.version = 11 : i64} {
  func.func private @main(%arg0: i32) attributes {dimension_semantics = [#tpu.dimension_semantics<core_parallel>], iteration_bounds = array<i64: 2>, tpu.core_type = #tpu.core_type<sc_scalar_subcore>, window_params = []} {
    return
  }
}

module attributes {stable_mosaic.version = 11 : i64} {
  func.func private @main(%arg0: i32) attributes {dimension_semantics = [#tpu.dimension_semantics<core_parallel>], iteration_bounds = array<i64: 2>, tpu.core_type = #tpu.core_type<sc_scalar_subcore>, window_params = []} {
    return
  }
}

module attributes {stable_mosaic.version = 11 : i64} {
  func.func @_selmul_outer_kernel(%arg0: i32, %arg1: memref<8x16x1xf32, #tpu.memory_space<vmem>>, %arg2: memref<8x1x128xf32, #tpu.memory_space<vmem>>, %arg3: memref<8x16x128xf32, #tpu.memory_space<vmem>>) attributes {dimension_semantics = [#tpu.dimension_semantics<parallel>], iteration_bounds = array<i64: 1>, scalar_prefetch = 0 : i64, scratch_operands = 0 : i64, tpu.core_type = #tpu.core_type<tc>, window_params = [{transform_indices = @transform_0, window_bounds = array<i64: 8, 16, 1>}, {transform_indices = @transform_1, window_bounds = array<i64: 8, 1, 128>}, {transform_indices = @transform_2, window_bounds = array<i64: 8, 16, 128>}]} {
    %c0 = arith.constant 0 : index
    %c0_0 = arith.constant 0 : index
    %c0_1 = arith.constant 0 : index
    %0 = vector.load %arg1[%c0, %c0_0, %c0_1] : memref<8x16x1xf32, #tpu.memory_space<vmem>>, vector<8x16x1xf32>
    %c0_2 = arith.constant 0 : index
    %c0_3 = arith.constant 0 : index
    %c0_4 = arith.constant 0 : index
    %1 = vector.load %arg2[%c0_2, %c0_3, %c0_4] : memref<8x1x128xf32, #tpu.memory_space<vmem>>, vector<8x1x128xf32>
    %2 = vector.broadcast %0 : vector<8x16x1xf32> to vector<8x16x128xf32>
    %3 = vector.broadcast %1 : vector<8x1x128xf32> to vector<8x16x128xf32>
    %4 = arith.mulf %2, %3 : vector<8x16x128xf32>
    %c0_5 = arith.constant 0 : index
    %c0_6 = arith.constant 0 : index
    %c0_7 = arith.constant 0 : index
    %5 = vector.load %arg3[%c0_5, %c0_6, %c0_7] : memref<8x16x128xf32, #tpu.memory_space<vmem>>, vector<8x16x128xf32>
    tpu.vector_store %arg3[%c0_5, %c0_6, %c0_7], %4 {strides = array<i32>} : memref<8x16x128xf32, #tpu.memory_space<vmem>>, vector<8x16x128xf32>,
    return
  }
  func.func @transform_0(%arg0: i32) -> (i32, i32, i32) {
    %c0_i32 = arith.constant 0 : i32
    %c0_i32_0 = arith.constant 0 : i32
    %c0_i32_1 = arith.constant 0 : i32
    return %arg0, %c0_i32, %c0_i32_0 : i32, i32, i32
  }
  func.func @transform_1(%arg0: i32) -> (i32, i32, i32) {
    %c0_i32 = arith.constant 0 : i32
    %c0_i32_0 = arith.constant 0 : i32
    %c0_i32_1 = arith.constant 0 : i32
    return %arg0, %c0_i32, %c0_i32_0 : i32, i32, i32
  }
  func.func @transform_2(%arg0: i32) -> (i32, i32, i32) {
    %c0_i32 = arith.constant 0 : i32
    %c0_i32_0 = arith.constant 0 : i32
    %c0_i32_1 = arith.constant 0 : i32
    return %arg0, %c0_i32, %c0_i32_0 : i32, i32, i32
  }
}

</mosaic_0001>

<bundles_post_ra>
// kernel: selmul_forward.1
= control target key start
LH: loop header
LB: loop body
LE: loop exit
PB: predicated region body
PF: predicated region fallthrough
CT: control target
= control target key end

     0   :  { %v210_v0 = vmov 0   ;;  %s346_s0 = inlined_call_operand.vmem [shape: f32[8,16,1], index: 0, kind: input, shape index: {}]   ;;  %s347_s1 = inlined_call_operand.vmem [shape: f32[8,1,128], index: 1, kind: input, shape index: {}]   ;;  %s348_s2 = inlined_call_operand.vmem [shape: f32[8,16,128], index: 2, kind: output, shape index: {}]  }
   0x1   :  { %209 = vset.pattern.permute.xlu1 %v210_v0  ;;  %208 = vset.pattern.permute.xlu0 %v210_v0  ;;  %v13_v1 = vld [vmem:[%s346_s0 + $0x10] sm:$0xff]  ;;  %v11_v2 = vld [vmem:[%s346_s0] sm:$0xff]  ;;  %v14_v3 = vld [vmem:[%s346_s0 + $0x18] sm:$0xff] }
   0x2   :  { %47 = vperm.xlu1 %209, %v13_v1   ;;  %37 = vperm.xlu0 %208, %v11_v2   ;;  %v12_v4 = vld [vmem:[%s346_s0 + $0x8] sm:$0xff]  ;;  %v15_v6 = vld [vmem:[%s346_s0 + $0x20] sm:$0xff]  ;;  %v18_v7 = vld [vmem:[%s346_s0 + $0x38] sm:$0xff] }
   0x3   :  { %v16_v5 = vld [vmem:[%s346_s0 + $0x28] sm:$0xff]  ;;  %v17_v8 = vld [vmem:[%s346_s0 + $0x30] sm:$0xff]  ;;  %v19_v10 = vld [vmem:[%s346_s0 + $0x40] sm:$0xff] }
   0x4   :  { %v20_v9 = vld [vmem:[%s346_s0 + $0x48] sm:$0xff]  ;;  %v22_v11 = vld [vmem:[%s346_s0 + $0x58] sm:$0xff]  ;;  %v21_v12 = vld [vmem:[%s346_s0 + $0x50] sm:$0xff] }
   0x5   :  { %v24_v13 = vld [vmem:[%s346_s0 + $0x68] sm:$0xff]  ;;  %v23_v14 = vld [vmem:[%s346_s0 + $0x60] sm:$0xff]  ;;  %v26_v15 = vld [vmem:[%s346_s0 + $0x78] sm:$0xff] }
   0x6   :  { %52 = vperm.xlu1 %209, %v14_v3   ;;  %42 = vperm.xlu0 %208, %v12_v4   ;;  %v25_v16 = vld [vmem:[%s346_s0 + $0x70] sm:$0xff]  ;;  %v200_v17 = vld [vmem:[%s347_s1 + $0x1] ss:$0 sm:$0xff]  ;;  %v199_v18 = vld [vmem:[%s347_s1] ss:$0 sm:$0xff] }
   0x7   :  { %v201_v27 = vld [vmem:[%s347_s1 + $0x2] ss:$0 sm:$0xff]  ;;  %v202_v32 = vld [vmem:[%s347_s1 + $0x3] ss:$0 sm:$0xff]  ;;  %v203_v37 = vld [vmem:[%s347_s1 + $0x4] ss:$0 sm:$0xff] }
   0x8   :  { %v204_v42 = vld [vmem:[%s347_s1 + $0x5] ss:$0 sm:$0xff]  ;;  %v205_v47 = vld [vmem:[%s347_s1 + $0x6] ss:$0 sm:$0xff]  ;;  %v206_v52 = vld [vmem:[%s347_s1 + $0x7] ss:$0 sm:$0xff] }
   0xa   :  { %62 = vperm.xlu1 %209, %v16_v5   ;;  %57 = vperm.xlu0 %208, %v15_v6  }
   0xe   :  { %72 = vperm.xlu1 %209, %v18_v7   ;;  %67 = vperm.xlu0 %208, %v17_v8  }
  0x12   :  { %82 = vperm.xlu1 %209, %v20_v9   ;;  %77 = vperm.xlu0 %208, %v19_v10  }
  0x16   :  { %92 = vperm.xlu1 %209, %v22_v11   ;;  %87 = vperm.xlu0 %208, %v21_v12  }
  0x1a   :  { %102 = vperm.xlu1 %209, %v24_v13   ;;  %97 = vperm.xlu0 %208, %v23_v14  }
  0x1e   :  { %112 = vperm.xlu1 %209, %v26_v15   ;;  %107 = vperm.xlu0 %208, %v25_v16  }
  0x7d   :  { %v48_v19 = vpop.permute.xlu1 %47  ;;  %v38_v20 = vpop.permute.xlu0 %37 }
  0x7e   :  { %v165_v21 = vmul.f32 %v200_v17, %v48_v19  ;;  %v163_v22 = vmul.f32 %v199_v18, %v38_v20 }
  0x80   :  { %181 = vst [vmem:[%s348_s2 + $0x10] sm:$0xff] %v165_v21  ;;  %179 = vst [vmem:[%s348_s2] sm:$0xff] %v163_v22 }
  0x81   :  { %v53_v23 = vpop.permute.xlu1 %52  ;;  %v43_v24 = vpop.permute.xlu0 %42 }
  0x82   :  { %v166_v25 = vmul.f32 %v200_v17, %v53_v23  ;;  %v164_v26 = vmul.f32 %v199_v18, %v43_v24 }
  0x84   :  { %182 = vst [vmem:[%s348_s2 + $0x18] sm:$0xff] %v166_v25  ;;  %180 = vst [vmem:[%s348_s2 + $0x8] sm:$0xff] %v164_v26 }
  0x85   :  { %v63_v28 = vpop.permute.xlu1 %62  ;;  %v58_v29 = vpop.permute.xlu0 %57 }
  0x86   :  { %v168_v30 = vmul.f32 %v201_v27, %v63_v28  ;;  %v167_v31 = vmul.f32 %v201_v27, %v58_v29 }
  0x88   :  { %184 = vst [vmem:[%s348_s2 + $0x28] sm:$0xff] %v168_v30  ;;  %183 = vst [vmem:[%s348_s2 + $0x20] sm:$0xff] %v167_v31 }
  0x89   :  { %v73_v33 = vpop.permute.xlu1 %72  ;;  %v68_v34 = vpop.permute.xlu0 %67 }
  0x8a   :  { %v170_v35 = vmul.f32 %v202_v32, %v73_v33  ;;  %v169_v36 = vmul.f32 %v202_v32, %v68_v34 }
  0x8c   :  { %186 = vst [vmem:[%s348_s2 + $0x38] sm:$0xff] %v170_v35  ;;  %185 = vst [vmem:[%s348_s2 + $0x30] sm:$0xff] %v169_v36 }
  0x8d   :  { %v83_v38 = vpop.permute.xlu1 %82  ;;  %v78_v39 = vpop.permute.xlu0 %77 }
  0x8e   :  { %v172_v40 = vmul.f32 %v203_v37, %v83_v38  ;;  %v171_v41 = vmul.f32 %v203_v37, %v78_v39 }
  0x90   :  { %188 = vst [vmem:[%s348_s2 + $0x48] sm:$0xff] %v172_v40  ;;  %187 = vst [vmem:[%s348_s2 + $0x40] sm:$0xff] %v171_v41 }
  0x91   :  { %v93_v43 = vpop.permute.xlu1 %92  ;;  %v88_v44 = vpop.permute.xlu0 %87 }
  0x92   :  { %v174_v45 = vmul.f32 %v204_v42, %v93_v43  ;;  %v173_v46 = vmul.f32 %v204_v42, %v88_v44 }
  0x94   :  { %190 = vst [vmem:[%s348_s2 + $0x58] sm:$0xff] %v174_v45  ;;  %189 = vst [vmem:[%s348_s2 + $0x50] sm:$0xff] %v173_v46 }
  0x95   :  { %v103_v48 = vpop.permute.xlu1 %102  ;;  %v98_v49 = vpop.permute.xlu0 %97 }
  0x96   :  { %v176_v50 = vmul.f32 %v205_v47, %v103_v48  ;;  %v175_v51 = vmul.f32 %v205_v47, %v98_v49 }
  0x98   :  { %192 = vst [vmem:[%s348_s2 + $0x68] sm:$0xff] %v176_v50  ;;  %191 = vst [vmem:[%s348_s2 + $0x60] sm:$0xff] %v175_v51 }
  0x99   :  { %v113_v53 = vpop.permute.xlu1 %112  ;;  %v108_v54 = vpop.permute.xlu0 %107 }
  0x9a   :  { %v178_v55 = vmul.f32 %v206_v52, %v113_v53  ;;  %v177_v56 = vmul.f32 %v206_v52, %v108_v54 }
  0x9c   :  { %194 = vst [vmem:[%s348_s2 + $0x78] sm:$0xff] %v178_v55  ;;  %193 = vst [vmem:[%s348_s2 + $0x70] sm:$0xff] %v177_v56 }

</bundles_post_ra>
